<compile_context>
chip_gen: v5e
topology: v5e:2x2
jax: 0.10.0
libtpu: 0.0.40
codegen_flags: <defaults>
</compile_context>

<pallas_src>
import jax
import jax.numpy as jnp
import numpy as np
from jax.experimental import pallas as pl
from jax.experimental.pallas import tpu as pltpu

H1 = 768
H2 = 256
LANE = 128


def _round_up(n, m):
    return ((n + m - 1) // m) * m


def _pick_tile(batch):
    """Batch-tile rows per grid step."""
    if batch >= 1024:
        return 512                                   # >=2 steps, big MXU runs
    if batch >= 256:
        # Split into (at least) two steps so both v7x TensorCores get work.
        return min(512, _round_up((batch + 1) // 2, 16))
    return _round_up(batch, 16)                       # native bf16 (16,128) tile


def dense_mlp_kernel(x_ref, w1_ref, b1_ref, w2_ref, b2_ref, w3_ref, b3_ref,
                     o_ref):
    # Three matmuls + ReLUs fused; bf16 operands feed the MXU, accumulation
    # and all elementwise work stay in f32 (v5e VPU has no bf16 ALU).
    x = x_ref[...].astype(jnp.bfloat16)                         # cast in VMEM
    h1 = jnp.dot(x, w1_ref[...], preferred_element_type=jnp.float32)
    h1 = jnp.maximum(h1 + b1_ref[...], 0.0)                     # f32
    h2 = jnp.dot(h1.astype(jnp.bfloat16), w2_ref[...],
                 preferred_element_type=jnp.float32)
    h2 = jnp.maximum(h2 + b2_ref[...], 0.0)                     # f32
    out = jnp.dot(h2.astype(jnp.bfloat16), w3_ref[...],
                  preferred_element_type=jnp.float32)
    out = out + b3_ref[...]
    o_ref[...] = out.astype(o_ref.dtype)


def prepare_params(params):
    """One-time cast/pad of the weights into the kernel layout.

    Call this ONCE and reuse the result across forward calls so the cast/pad
    HLO does not run on every inference call.
    """
    bf = jnp.bfloat16
    w1 = params["w1"].astype(bf)                       # (Cin, 768), unpadded
    w2 = params["w2"].astype(bf)                       # (768, 256)
    w3 = params["w3"]
    cout = w3.shape[1]
    cout_p = _round_up(cout, LANE)                     # lane-dense output
    w3_p = jnp.zeros((H2, cout_p), bf).at[:, :cout].set(w3.astype(bf))
    b1 = params["b1"].reshape(1, H1).astype(jnp.float32)
    b2 = params["b2"].reshape(1, H2).astype(jnp.float32)
    b3_p = jnp.zeros((1, cout_p), jnp.float32).at[:, :cout].set(
        params["b3"].reshape(1, cout).astype(jnp.float32))
    return dict(w1=w1, b1=b1, w2=w2, b2=b2, w3=w3_p, b3=b3_p, cout=cout)


def dense_forward(x, prepped, out_dtype=jnp.float32):
    """x: (B, Cin) float32 (or bf16). prepped: output of prepare_params."""
    w1, b1, w2, b2, w3, b3 = (prepped["w1"], prepped["b1"], prepped["w2"],
                              prepped["b2"], prepped["w3"], prepped["b3"])
    cout = prepped["cout"]
    B, cin = x.shape
    cout_p = w3.shape[1]

    tm = _pick_tile(B)
    grid = (pl.cdiv(B, tm),)                           # ragged last tile OK

    out = pl.pallas_call(
        dense_mlp_kernel,
        out_shape=jax.ShapeDtypeStruct((B, cout_p), out_dtype),
        grid=grid,
        in_specs=[
            # x tile marches with the batch grid; full-Cin block (== array dim).
            pl.BlockSpec((tm, cin), lambda i: (i, 0)),
            # Weights / biases: same block every step -> resident in VMEM.
            pl.BlockSpec((cin, H1), lambda i: (0, 0)),
            pl.BlockSpec((1, H1), lambda i: (0, 0)),
            pl.BlockSpec((H1, H2), lambda i: (0, 0)),
            pl.BlockSpec((1, H2), lambda i: (0, 0)),
            pl.BlockSpec((H2, cout_p), lambda i: (0, 0)),
            pl.BlockSpec((1, cout_p), lambda i: (0, 0)),
        ],
        out_specs=pl.BlockSpec((tm, cout_p), lambda i: (i, 0)),
        compiler_params=pltpu.CompilerParams(
            dimension_semantics=("parallel",),          # shard batch over TCs
            vmem_limit_bytes=48 * 1024 * 1024),         # headroom on v7x
    )(x, w1, b1, w2, b2, w3, b3)

    # Strip the lane padding of the output.
    return out[:, :cout]


def init_linear(key, fan_in, fan_out):
    # Mimic torch.nn.Linear default init: U(-1/sqrt(fan_in), 1/sqrt(fan_in)).
    kw, kb = jax.random.split(key)
    bound = 1.0 / np.sqrt(fan_in)
    w = jax.random.uniform(kw, (fan_in, fan_out), jnp.float32, -bound, bound)
    # bias kept 2-D (1, fan_out) so it broadcasts cleanly in the kernel
    b = jax.random.uniform(kb, (1, fan_out), jnp.float32, -bound, bound)
    return w, b


def reference_forward(x, p):
    h1 = jnp.maximum(x @ p["w1"] + p["b1"], 0.0)
    h2 = jnp.maximum(h1 @ p["w2"] + p["b2"], 0.0)
    return h2 @ p["w3"] + p["b3"]


if __name__ == "__main__":
    input_channels = 32
    out_channels = 16
    batch = 8

    key = jax.random.PRNGKey(0)
    k_x, k1, k2, k3 = jax.random.split(key, 4)

    x = jax.random.normal(k_x, (batch, input_channels), jnp.float32)
    w1, b1 = init_linear(k1, input_channels, H1)
    w2, b2 = init_linear(k2, H1, H2)
    w3, b3 = init_linear(k3, H2, out_channels)
    params = dict(w1=w1, b1=b1, w2=w2, b2=b2, w3=w3, b3=b3)

    # One-time weight cast/pad (cached across calls).
    prepped = jax.tree_util.tree_map(jax.block_until_ready,
                                     prepare_params(params))

    out = dense_forward(x, prepped)
    out = jax.block_until_ready(out)

    ref = jax.block_until_ready(reference_forward(x, params))
    # bf16 matmul inputs (f32 accumulation) vs. the f32 reference: loosen tol.
    np.testing.assert_allclose(np.asarray(out), np.asarray(ref),
                               rtol=2e-2, atol=2e-2)
    print("KERNEL_OK")
</pallas_src>

<mosaic_0001>
module attributes {stable_mosaic.version = 11 : i64} {
  func.func @dense_mlp_kernel(%arg0: i32, %arg1: memref<16x32xf32, #tpu.memory_space<vmem>>, %arg2: memref<32x768xbf16, #tpu.memory_space<vmem>>, %arg3: memref<1x768xf32, #tpu.memory_space<vmem>>, %arg4: memref<768x256xbf16, #tpu.memory_space<vmem>>, %arg5: memref<1x256xf32, #tpu.memory_space<vmem>>, %arg6: memref<256x128xbf16, #tpu.memory_space<vmem>>, %arg7: memref<1x128xf32, #tpu.memory_space<vmem>>, %arg8: memref<16x128xf32, #tpu.memory_space<vmem>>) attributes {dimension_semantics = [#tpu.dimension_semantics<parallel>], iteration_bounds = array<i64: 1>, scalar_prefetch = 0 : i64, scratch_operands = 0 : i64, tpu.core_type = #tpu.core_type<tc>, window_params = [{transform_indices = @transform_0, window_bounds = array<i64: 16, 32>}, {pipeline_mode = #tpu.pipeline_mode<synchronous>, transform_indices = @transform_1, window_bounds = array<i64: 32, 768>}, {pipeline_mode = #tpu.pipeline_mode<synchronous>, transform_indices = @transform_2, window_bounds = array<i64: 1, 768>}, {pipeline_mode = #tpu.pipeline_mode<synchronous>, transform_indices = @transform_3, window_bounds = array<i64: 768, 256>}, {pipeline_mode = #tpu.pipeline_mode<synchronous>, transform_indices = @transform_4, window_bounds = array<i64: 1, 256>}, {pipeline_mode = #tpu.pipeline_mode<synchronous>, transform_indices = @transform_5, window_bounds = array<i64: 256, 128>}, {pipeline_mode = #tpu.pipeline_mode<synchronous>, transform_indices = @transform_6, window_bounds = array<i64: 1, 128>}, {transform_indices = @transform_7, window_bounds = array<i64: 16, 128>}]} {
    %c0 = arith.constant 0 : index
    %c0_0 = arith.constant 0 : index
    %0 = vector.load %arg1[%c0, %c0_0] : memref<16x32xf32, #tpu.memory_space<vmem>>, vector<16x32xf32>
    %1 = arith.truncf %0 : vector<16x32xf32> to vector<16x32xbf16>
    %c0_1 = arith.constant 0 : index
    %c0_2 = arith.constant 0 : index
    %2 = vector.load %arg2[%c0_1, %c0_2] : memref<32x768xbf16, #tpu.memory_space<vmem>>, vector<32x768xbf16>
    %cst = arith.constant dense<0.000000e+00> : vector<16x768xf32>
    %3 = tpu.matmul %1, %2, %cst {dimension_numbers = #tpu.dot_dimension_numbers<[1], [0], [0], [1], [0, 0, 1, 1], [], []>} : vector<16x32xbf16>, vector<32x768xbf16>, vector<16x768xf32> -> vector<16x768xf32>
    %c0_3 = arith.constant 0 : index
    %c0_4 = arith.constant 0 : index
    %4 = vector.load %arg3[%c0_3, %c0_4] : memref<1x768xf32, #tpu.memory_space<vmem>>, vector<1x768xf32>
    %5 = vector.broadcast %4 : vector<1x768xf32> to vector<16x768xf32>
    %6 = arith.addf %3, %5 : vector<16x768xf32>
    %cst_5 = arith.constant 0.000000e+00 : f32
    %7 = vector.broadcast %cst_5 : f32 to vector<16x768xf32>
    %8 = arith.maximumf %6, %7 : vector<16x768xf32>
    %9 = arith.truncf %8 : vector<16x768xf32> to vector<16x768xbf16>
    %c0_6 = arith.constant 0 : index
    %c0_7 = arith.constant 0 : index
    %10 = vector.load %arg4[%c0_6, %c0_7] : memref<768x256xbf16, #tpu.memory_space<vmem>>, vector<768x256xbf16>
    %cst_8 = arith.constant dense<0.000000e+00> : vector<16x256xf32>
    %11 = tpu.matmul %9, %10, %cst_8 {dimension_numbers = #tpu.dot_dimension_numbers<[1], [0], [0], [1], [0, 0, 1, 1], [], []>} : vector<16x768xbf16>, vector<768x256xbf16>, vector<16x256xf32> -> vector<16x256xf32>
    %c0_9 = arith.constant 0 : index
    %c0_10 = arith.constant 0 : index
    %12 = vector.load %arg5[%c0_9, %c0_10] : memref<1x256xf32, #tpu.memory_space<vmem>>, vector<1x256xf32>
    %13 = vector.broadcast %12 : vector<1x256xf32> to vector<16x256xf32>
    %14 = arith.addf %11, %13 : vector<16x256xf32>
    %cst_11 = arith.constant 0.000000e+00 : f32
    %15 = vector.broadcast %cst_11 : f32 to vector<16x256xf32>
    %16 = arith.maximumf %14, %15 : vector<16x256xf32>
    %17 = arith.truncf %16 : vector<16x256xf32> to vector<16x256xbf16>
    %c0_12 = arith.constant 0 : index
    %c0_13 = arith.constant 0 : index
    %18 = vector.load %arg6[%c0_12, %c0_13] : memref<256x128xbf16, #tpu.memory_space<vmem>>, vector<256x128xbf16>
    %cst_14 = arith.constant dense<0.000000e+00> : vector<16x128xf32>
    %19 = tpu.matmul %17, %18, %cst_14 {dimension_numbers = #tpu.dot_dimension_numbers<[1], [0], [0], [1], [0, 0, 1, 1], [], []>} : vector<16x256xbf16>, vector<256x128xbf16>, vector<16x128xf32> -> vector<16x128xf32>
    %c0_15 = arith.constant 0 : index
    %c0_16 = arith.constant 0 : index
    %20 = vector.load %arg7[%c0_15, %c0_16] : memref<1x128xf32, #tpu.memory_space<vmem>>, vector<1x128xf32>
    %21 = vector.broadcast %20 : vector<1x128xf32> to vector<16x128xf32>
    %22 = arith.addf %19, %21 : vector<16x128xf32>
    %c0_17 = arith.constant 0 : index
    %c0_18 = arith.constant 0 : index
    %23 = vector.load %arg8[%c0_17, %c0_18] : memref<16x128xf32, #tpu.memory_space<vmem>>, vector<16x128xf32>
    tpu.vector_store %arg8[%c0_17, %c0_18], %22 {strides = array<i32>} : memref<16x128xf32, #tpu.memory_space<vmem>>, vector<16x128xf32>,
    return
  }
  func.func @transform_0(%arg0: i32) -> (i32, i32) {
    %c0_i32 = arith.constant 0 : i32
    %c0_i32_0 = arith.constant 0 : i32
    return %arg0, %c0_i32 : i32, i32
  }
  func.func @transform_1(%arg0: i32) -> (i32, i32) {
    %c0_i32 = arith.constant 0 : i32
    %c0_i32_0 = arith.constant 0 : i32
    %c0_i32_1 = arith.constant 0 : i32
    return %c0_i32, %c0_i32_0 : i32, i32
  }
  func.func @transform_2(%arg0: i32) -> (i32, i32) {
    %c0_i32 = arith.constant 0 : i32
    %c0_i32_0 = arith.constant 0 : i32
    %c0_i32_1 = arith.constant 0 : i32
    return %c0_i32, %c0_i32_0 : i32, i32
  }
  func.func @transform_3(%arg0: i32) -> (i32, i32) {
    %c0_i32 = arith.constant 0 : i32
    %c0_i32_0 = arith.constant 0 : i32
    %c0_i32_1 = arith.constant 0 : i32
    return %c0_i32, %c0_i32_0 : i32, i32
  }
  func.func @transform_4(%arg0: i32) -> (i32, i32) {
    %c0_i32 = arith.constant 0 : i32
    %c0_i32_0 = arith.constant 0 : i32
    %c0_i32_1 = arith.constant 0 : i32
    return %c0_i32, %c0_i32_0 : i32, i32
  }
  func.func @transform_5(%arg0: i32) -> (i32, i32) {
    %c0_i32 = arith.constant 0 : i32
    %c0_i32_0 = arith.constant 0 : i32
    %c0_i32_1 = arith.constant 0 : i32
    return %c0_i32, %c0_i32_0 : i32, i32
  }
  func.func @transform_6(%arg0: i32) -> (i32, i32) {
    %c0_i32 = arith.constant 0 : i32
    %c0_i32_0 = arith.constant 0 : i32
    %c0_i32_1 = arith.constant 0 : i32
    return %c0_i32, %c0_i32_0 : i32, i32
  }
  func.func @transform_7(%arg0: i32) -> (i32, i32) {
    %c0_i32 = arith.constant 0 : i32
    %c0_i32_0 = arith.constant 0 : i32
    return %arg0, %c0_i32 : i32, i32
  }
}

</mosaic_0001>

<bundles_post_ra>
// kernel: tpu_custom_call.1
= control target key start
LH: loop header
LB: loop body
LE: loop exit
PB: predicated region body
PF: predicated region fallthrough
CT: control target
= control target key end

     0   :  { %12 = vsyncpa [#allocation3], 0  ;;  %s2160_s0 = inlined_call_operand.hbm [shape: f32[8,32], index: 0, kind: input, shape index: {}]   ;;  %s2161_s1 = inlined_call_operand.hbm [shape: bf16[32,768], index: 1, kind: input, shape index: {}]   ;;  %s2162_s2 = inlined_call_operand.hbm [shape: f32[1,768], index: 2, kind: input, shape index: {}]   ;;  %s2163_s3 = inlined_call_operand.hbm [shape: bf16[768,256], index: 3, kind: input, shape index: {}]   ;;  %s2164_s4 = inlined_call_operand.vmem [shape: f32[1,256], index: 4, kind: input, shape index: {}]   ;;  %s2165_s5 = inlined_call_operand.hbm [shape: bf16[256,128], index: 5, kind: input, shape index: {}]   ;;  %s2166_s6 = inlined_call_operand.vmem [shape: f32[1,128], index: 6, kind: input, shape index: {}]   ;;  %s2167_s7 = inlined_call_operand.hbm [shape: f32[8,128], index: 7, kind: output, shape index: {}]  }
   0x1   :  { %13 = vsyncpa [#allocation6], 0 }
   0x2   :  { %14 = vsyncpa [#allocation9], 0 }
   0x3   :  { %15 = vsyncpa [#allocation4], 0  ;;  %s33_s26 = sshll.u32 %s2161_s1, 4  ;;  %s34_s26 = int_to_ptr.hbm [resolvable:$true] %s33_s26 }
   0x4   :  { %19 = vsyncadd [#allocation3], 128  ;;  %s2029_s27 = smov [#allocation5]   ;;  %s2030_s29 = smov 384  }
   0x5   :  { %s35_s28 = sshll.u32 %s2029_s27, 4  ;;  %s2031_s30 = smov 24   ;;  %s36_s28 = int_to_ptr.vmem [resolvable:$true] %s35_s28 }
   0x6   :  { %41 = dma.hbm_to_vmem [thread:$0]  %s34_s26, 1536, %s36_s28, [#allocation6], %s2030_s29, %s2030_s29, %s2031_s30  }
   0x7   :  { %s57_s10 = sshll.u32 %s2163_s3, 4  ;;  %s2032_s11 = smov [#allocation8]   ;;  %s58_s10 = int_to_ptr.hbm [resolvable:$true] %s57_s10 }
   0x8   :  { %s59_s12 = sshll.u32 %s2032_s11, 4  ;;  %s20_s15 = sshll.u32 %s2160_s0, 4  ;;  %s60_s12 = int_to_ptr.vmem [resolvable:$true] %s59_s12  ;;  %s21_s15 = int_to_ptr.hbm [resolvable:$true] %s20_s15 }
   0x9   :  { %s2033_s1 = smov 128   ;;  %s2034_s16 = smov 8  }
   0xa   :  { %65 = dma.hbm_to_vmem [thread:$0]  %s58_s10, 12288, %s60_s12, [#allocation9], %s2033_s1, %s2033_s1, %s2034_s16  }
   0xb   :  { %s47_s19 = sshll.u32 %s2162_s2, 4  ;;  %s2035_s3 = smov [#allocation2]   ;;  %s48_s19 = int_to_ptr.hbm [resolvable:$true] %s47_s19 }
   0xc   :  { %s22_s20 = sshll.u32 %s2035_s3, 4  ;;  %s2036_s0 = smov [#allocation7]   ;;  %s23_s20 = int_to_ptr.vmem [resolvable:$true] %s22_s20 }
   0xd   :  { %28 = dma.hbm_to_vmem [thread:$0]  %s21_s15, 128, %s23_s20, [#allocation3], %s2033_s1, %s2033_s1, %s2034_s16  }
   0xe   :  { %s49_s21 = sshll.u32 %s2036_s0, 4  ;;  %s72_s24 = sshll.u32 %s2165_s5, 4  ;;  %s50_s21 = int_to_ptr.vmem [resolvable:$true] %s49_s21  ;;  %s73_s24 = int_to_ptr.hbm [resolvable:$true] %s72_s24 }
   0xf   :  { %52 = dma.hbm_to_vmem [thread:$0]  %s48_s19, 96, %s50_s21, [#allocation6]  }
  0x10   :  { %s2037_s25 = smov [#allocation10]   ;;  %s2038_s2 = smov 64  }
  0x11   :  { %s74_s26 = sshll.u32 %s2037_s25, 4  ;;  %s2039_s27 = smov 4   ;;  %s75_s26 = int_to_ptr.vmem [resolvable:$true] %s74_s26 }
  0x12   :  { %80 = dma.hbm_to_vmem [thread:$0]  %s73_s24, 2048, %s75_s26, [#allocation9], %s2038_s2, %s2038_s2, %s2039_s27  }
  0x13   :  { %2021 = dma.done.wait [#allocation3], 256  }
  0x14   :  { %2022 = vsyncadd [#allocation3], 4294967040 }
  0x15   :  { %2023 = dma.done.wait [#allocation6], 1632  }
  0x16   :  { %2024 = vsyncadd [#allocation6], 4294965664 }
  0x17   :  { %2025 = dma.done.wait [#allocation9], 14336  }
  0x18   :  { %2026 = vsyncadd [#allocation9], 4294952960  ;;  %v1264_v0 = vld [vmem:[#allocation5 + $0x30] sm:$0xf]  ;;  %v1749_v1 = vld [vmem:[#allocation5 + $0x44] sm:$0xf0] }
  0x19   :  { %v1746_v2 = vld [vmem:[#allocation5 + $0x34] sm:$0xf]  ;;  %v1265_v3 = vor.u32 %v1749_v1, %v1264_v0  ;;  %v1266_v4 = vld [vmem:[#allocation5 + $0x48] sm:$0xf0]  ;;  %v1272_v5 = vld [vmem:[#allocation5 + $0x38] sm:$0xf] }
  0x1a   :  { %v1750_v6 = vld [vmem:[#allocation5 + $0x4c] sm:$0xf0]  ;;  %v1269_v7 = vor.u32 %v1746_v2, %v1266_v4  ;;  %v1747_v9 = vld [vmem:[#allocation5 + $0x3c] sm:$0xf]  ;;  %v1274_v10 = vld [vmem:[#allocation5 + $0x50] sm:$0xf0] }
  0x1b   :  { %v1273_v8 = vor.u32 %v1750_v6, %v1272_v5  ;;  %v1240_v11 = vld [vmem:[#allocation5] sm:$0xf]  ;;  %203 = vmatpush.bf16.msra.mxu0 %v1265_v3  ;;  %v1277_v12 = vor.u32 %v1747_v9, %v1274_v10  ;;  %v1743_v13 = vld [vmem:[#allocation5 + $0x14] sm:$0xf0]  ;;  %v1740_v14 = vld [vmem:[#allocation5 + $0x4] sm:$0xf] }
  0x1c   :  { %v1242_v15 = vld [vmem:[#allocation5 + $0x18] sm:$0xf0]  ;;  %217 = vmatpush.bf16.msra.mxu1 %v1269_v7  ;;  %v1241_v16 = vor.u32 %v1743_v13, %v1240_v11  ;;  %v1248_v18 = vld [vmem:[#allocation5 + $0x8] sm:$0xf]  ;;  %v1744_v19 = vld [vmem:[#allocation5 + $0x1c] sm:$0xf0] }
  0x1d   :  { %231 = vmatpush.bf16.msra.mxu2 %v1273_v8  ;;  %v1245_v17 = vor.u32 %v1740_v14, %v1242_v15  ;;  %v1741_v20 = vld [vmem:[#allocation5 + $0xc] sm:$0xf]  ;;  %245 = vmatpush.bf16.msra.mxu3 %v1277_v12  ;;  %v1249_v21 = vor.u32 %v1744_v19, %v1248_v18  ;;  %v1250_v22 = vld [vmem:[#allocation5 + $0x20] sm:$0xf0]  ;;  %v104_v23 = vld [vmem:[#allocation2] sm:$0xff]  ;;  %vm193_vm0 = vcmask 261120  }
  0x1e   :  { %v105_v24 = vld [vmem:[#allocation2 + $0x8] sm:$0xff]  ;;  %v1253_v25 = vor.u32 %v1741_v20, %v1250_v22  ;;  %v1280_v27 = vld [vmem:[#allocation5 + $0x40] sm:$0xf]  ;;  %v1748_v29 = vld [vmem:[#allocation5 + $0x44] sm:$0xf] }
  0x1f   :  { %v2102_v26 = vpack.c.bf16 %v105_v24, %v104_v23  ;;  %v1751_v28 = vld [vmem:[#allocation5 + $0x54] sm:$0xf0]  ;;  %204 = vmatpush.bf16.msra.mxu0 %v1241_v16  ;;  %v1282_v31 = vld [vmem:[#allocation5 + $0x58] sm:$0xf0]  ;;  %v1256_v32 = vld [vmem:[#allocation5 + $0x10] sm:$0xf] }
  0x20   :  { %v1281_v30 = vor.u32 %v1751_v28, %v1280_v27  ;;  %v1745_v33 = vld [vmem:[#allocation5 + $0x24] sm:$0xf0]  ;;  %218 = vmatpush.bf16.msra.mxu1 %v1245_v17  ;;  %v1285_v34 = vor.u32 %v1748_v29, %v1282_v31  ;;  %v1742_v35 = vld [vmem:[#allocation5 + $0x14] sm:$0xf]  ;;  %v1258_v36 = vld [vmem:[#allocation5 + $0x28] sm:$0xf0] }
  0x21   :  { %232 = vmatpush.bf16.msra.mxu2 %v1249_v21  ;;  %v1350_v37 = vld [vmem:[#allocation8 + $0x70] sm:$0xf]  ;;  %246 = vmatpush.bf16.msra.mxu3 %v1253_v25  ;;  %v1257_v38 = vor.u32 %v1745_v33, %v1256_v32  ;;  %v1767_v39 = vld [vmem:[#allocation8 + $0x74] sm:$0xf0]  ;;  %v1261_v42 = vor.u32 %v1742_v35, %v1258_v36  ;;  %v1342_v45 = vld [vmem:[#allocation8 + $0x60] sm:$0xf] }
  0x22   :  { %v1414_v40 = vld [vmem:[#allocation8 + $0xf0] sm:$0xf]  ;;  %v1783_v41 = vld [vmem:[#allocation8 + $0xf4] sm:$0xf0]  ;;  %1286 = vmatmul.msk.bf16.vlgmr.msra.gmra.mxu0 %vm193_vm0, %v2102_v26  ;;  %v1351_v43 = vor.u32 %v1767_v39, %v1350_v37  ;;  %v1765_v46 = vld [vmem:[#allocation8 + $0x64] sm:$0xf0] }
  0x23   :  { %259 = vmatpush.bf16.msrb.mxu0 %v1281_v30  ;;  %v1415_v44 = vor.u32 %v1783_v41, %v1414_v40  ;;  %v1406_v47 = vld [vmem:[#allocation8 + $0xe0] sm:$0xf]  ;;  %1287 = vmatmul.msk.bf16.vlgmr.msra.gmra.mxu1 %vm193_vm0, %v2102_v26  ;;  %v1781_v48 = vld [vmem:[#allocation8 + $0xe4] sm:$0xf0]  ;;  %v1478_v49 = vld [vmem:[#allocation8 + $0x170] sm:$0xf]  ;;  %v1343_v51 = vor.u32 %v1765_v46, %v1342_v45 }
  0x24   :  { %273 = vmatpush.bf16.msrb.mxu1 %v1285_v34  ;;  %1288 = vmatmul.msk.bf16.vlgmr.msra.gmra.mxu2 %vm193_vm0, %v2102_v26  ;;  %v1799_v50 = vld [vmem:[#allocation8 + $0x174] sm:$0xf0]  ;;  %v1542_v53 = vld [vmem:[#allocation8 + $0x1f0] sm:$0xf]  ;;  %v1407_v56 = vor.u32 %v1781_v48, %v1406_v47  ;;  %v1470_v61 = vld [vmem:[#allocation8 + $0x160] sm:$0xf] }
  0x25   :  { %1289 = vmatmul.msk.bf16.vlgmr.msra.gmra.mxu3 %vm193_vm0, %v2102_v26  ;;  %881 = vmatpush.bf16.msrb.mxu2 %v1351_v43  ;;  %v1479_v52 = vor.u32 %v1799_v50, %v1478_v49  ;;  %v1815_v54 = vld [vmem:[#allocation8 + $0x1f4] sm:$0xf0]  ;;  %v1334_v55 = vld [vmem:[#allocation8 + $0x50] sm:$0xf]  ;;  %v1797_v62 = vld [vmem:[#allocation8 + $0x164] sm:$0xf0] }
  0x26   :  { %895 = vmatpush.bf16.msrb.mxu3 %v1415_v44  ;;  %v1543_v57 = vor.u32 %v1815_v54, %v1542_v53  ;;  %v1763_v58 = vld [vmem:[#allocation8 + $0x54] sm:$0xf0]  ;;  %v1398_v59 = vld [vmem:[#allocation8 + $0xd0] sm:$0xf]  ;;  %v1534_v63 = vld [vmem:[#allocation8 + $0x1e0] sm:$0xf]  ;;  %v1471_v0 = vor.u32 %v1797_v62, %v1470_v61 }
  0x27   :  { %260 = vmatpush.bf16.msrb.mxu0 %v1257_v38  ;;  %v1779_v60 = vld [vmem:[#allocation8 + $0xd4] sm:$0xf0]  ;;  %v1813_v1 = vld [vmem:[#allocation8 + $0x1e4] sm:$0xf0]  ;;  %v1335_v2 = vor.u32 %v1763_v58, %v1334_v55  ;;  %v1326_v4 = vld [vmem:[#allocation8 + $0x40] sm:$0xf] }
  0x28   :  { %274 = vmatpush.bf16.msrb.mxu1 %v1261_v42  ;;  %v1535_v3 = vor.u32 %v1813_v1, %v1534_v63  ;;  %v1761_v5 = vld [vmem:[#allocation8 + $0x44] sm:$0xf0]  ;;  %v1462_v6 = vld [vmem:[#allocation8 + $0x150] sm:$0xf]  ;;  %v1399_v7 = vor.u32 %v1779_v60, %v1398_v59  ;;  %v1795_v8 = vld [vmem:[#allocation8 + $0x154] sm:$0xf0] }
  0x29   :  { %882 = vmatpush.bf16.msrb.mxu2 %v1343_v51  ;;  %v1526_v9 = vld [vmem:[#allocation8 + $0x1d0] sm:$0xf]  ;;  %v1811_v10 = vld [vmem:[#allocation8 + $0x1d4] sm:$0xf0]  ;;  %v1390_v11 = vld [vmem:[#allocation8 + $0xc0] sm:$0xf]  ;;  %v1463_v13 = vor.u32 %v1795_v8, %v1462_v6  ;;  %v1327_v15 = vor.u32 %v1761_v5, %v1326_v4 }
  0x2a   :  { %896 = vmatpush.bf16.msrb.mxu3 %v1407_v56  ;;  %v1777_v12 = vld [vmem:[#allocation8 + $0xc4] sm:$0xf0]  ;;  %v1527_v14 = vor.u32 %v1811_v10, %v1526_v9  ;;  %v1318_v16 = vld [vmem:[#allocation8 + $0x30] sm:$0xf]  ;;  %v1454_v17 = vld [vmem:[#allocation8 + $0x140] sm:$0xf] }
  0x2b   :  { %909 = vmatpush.bf16.msra.mxu0 %v1479_v52  ;;  %v1793_v18 = vld [vmem:[#allocation8 + $0x144] sm:$0xf0]  ;;  %v1391_v19 = vor.u32 %v1777_v12, %v1390_v11  ;;  %v1759_v20 = vld [vmem:[#allocation8 + $0x34] sm:$0xf0]  ;;  %v1518_v21 = vld [vmem:[#allocation8 + $0x1c0] sm:$0xf] }
  0x2c   :  { %923 = vmatpush.bf16.msra.mxu1 %v1543_v57  ;;  %v1809_v22 = vld [vmem:[#allocation8 + $0x1c4] sm:$0xf0]  ;;  %v1382_v23 = vld [vmem:[#allocation8 + $0xb0] sm:$0xf]  ;;  %v1775_v24 = vld [vmem:[#allocation8 + $0xb4] sm:$0xf0]  ;;  %v1455_v25 = vor.u32 %v1793_v18, %v1454_v17  ;;  %v1319_v27 = vor.u32 %v1759_v20, %v1318_v16 }
  0x2d   :  { %883 = vmatpush.bf16.msrb.mxu2 %v1335_v2  ;;  %v1519_v28 = vor.u32 %v1809_v22, %v1518_v21  ;;  %v1310_v29 = vld [vmem:[#allocation8 + $0x20] sm:$0xf]  ;;  %v1446_v30 = vld [vmem:[#allocation8 + $0x130] sm:$0xf]  ;;  %v1791_v31 = vld [vmem:[#allocation8 + $0x134] sm:$0xf0]  ;;  %v1383_v32 = vor.u32 %v1775_v24, %v1382_v23 }
  0x2e   :  { %897 = vmatpush.bf16.msrb.mxu3 %v1399_v7  ;;  %v1757_v33 = vld [vmem:[#allocation8 + $0x24] sm:$0xf0]  ;;  %v1510_v34 = vld [vmem:[#allocation8 + $0x1b0] sm:$0xf]  ;;  %v1807_v35 = vld [vmem:[#allocation8 + $0x1b4] sm:$0xf0]  ;;  %v1447_v38 = vor.u32 %v1791_v31, %v1446_v30 }
  0x2f   :  { %910 = vmatpush.bf16.msra.mxu0 %v1471_v0  ;;  %v1374_v36 = vld [vmem:[#allocation8 + $0xa0] sm:$0xf]  ;;  %v1773_v37 = vld [vmem:[#allocation8 + $0xa4] sm:$0xf0]  ;;  %v1311_v39 = vor.u32 %v1757_v33, %v1310_v29  ;;  %v1511_v40 = vor.u32 %v1807_v35, %v1510_v34  ;;  %v1302_v41 = vld [vmem:[#allocation8 + $0x10] sm:$0xf] }
  0x30   :  { %924 = vmatpush.bf16.msra.mxu1 %v1535_v3  ;;  %v1438_v42 = vld [vmem:[#allocation8 + $0x120] sm:$0xf]  ;;  %v1789_v43 = vld [vmem:[#allocation8 + $0x124] sm:$0xf0]  ;;  %v1375_v44 = vor.u32 %v1773_v37, %v1374_v36  ;;  %v1755_v45 = vld [vmem:[#allocation8 + $0x14] sm:$0xf0] }
  0x31   :  { %884 = vmatpush.bf16.msrb.mxu2 %v1327_v15  ;;  %v1502_v46 = vld [vmem:[#allocation8 + $0x1a0] sm:$0xf]  ;;  %v1805_v47 = vld [vmem:[#allocation8 + $0x1a4] sm:$0xf0]  ;;  %v1366_v48 = vld [vmem:[#allocation8 + $0x90] sm:$0xf]  ;;  %v1439_v50 = vor.u32 %v1789_v43, %v1438_v42 }
  0x32   :  { %898 = vmatpush.bf16.msrb.mxu3 %v1391_v19  ;;  %1290 = vmatmul.msk.bf16.vlgmr.msrb.gmra.mxu0 %vm193_vm0, %v2102_v26  ;;  %v1771_v49 = vld [vmem:[#allocation8 + $0x94] sm:$0xf0]  ;;  %v1294_v51 = vld [vmem:[#allocation8] sm:$0xf]  ;;  %v1503_v52 = vor.u32 %v1805_v47, %v1502_v46  ;;  %v1753_v53 = vld [vmem:[#allocation8 + $0x4] sm:$0xf0] }
  0x33   :  { %911 = vmatpush.bf16.msra.mxu0 %v1463_v13  ;;  %1291 = vmatmul.msk.bf16.vlgmr.msrb.gmra.mxu1 %vm193_vm0, %v2102_v26  ;;  %v1303_v26 = vor.u32 %v1755_v45, %v1302_v41  ;;  %v1430_v54 = vld [vmem:[#allocation8 + $0x110] sm:$0xf]  ;;  %v1787_v55 = vld [vmem:[#allocation8 + $0x114] sm:$0xf0]  ;;  %v1367_v56 = vor.u32 %v1771_v49, %v1366_v48  ;;  %v1358_v57 = vld [vmem:[#allocation8 + $0x80] sm:$0xf]  ;;  %v1295_v2 = vor.u32 %v1753_v53, %v1294_v51 }
  0x34   :  { %925 = vmatpush.bf16.msra.mxu1 %v1527_v14  ;;  %v1494_v58 = vld [vmem:[#allocation8 + $0x190] sm:$0xf]  ;;  %v1803_v59 = vld [vmem:[#allocation8 + $0x194] sm:$0xf0]  ;;  %v1769_v60 = vld [vmem:[#allocation8 + $0x84] sm:$0xf0]  ;;  %v1431_v1 = vor.u32 %v1787_v55, %v1430_v54 }
  0x35   :  { %885 = vmatpush.bf16.msrb.mxu2 %v1319_v27  ;;  %v1606_v61 = vld [vmem:[#allocation8 + $0x270] sm:$0xf]  ;;  %v1831_v62 = vld [vmem:[#allocation8 + $0x274] sm:$0xf0]  ;;  %v1495_v3 = vor.u32 %v1803_v59, %v1494_v58  ;;  %v1598_v4 = vld [vmem:[#allocation8 + $0x260] sm:$0xf]  ;;  %v1359_v9 = vor.u32 %v1769_v60, %v1358_v57 }
  0x36   :  { %899 = vmatpush.bf16.msrb.mxu3 %v1383_v32  ;;  %v1670_v63 = vld [vmem:[#allocation8 + $0x2f0] sm:$0xf]  ;;  %v1847_v0 = vld [vmem:[#allocation8 + $0x2f4] sm:$0xf0]  ;;  %v1829_v5 = vld [vmem:[#allocation8 + $0x264] sm:$0xf0]  ;;  %v1607_v10 = vor.u32 %v1831_v62, %v1606_v61 }
  0x37   :  { %912 = vmatpush.bf16.msra.mxu0 %v1455_v25  ;;  %v1422_v6 = vld [vmem:[#allocation8 + $0x100] sm:$0xf]  ;;  %v1785_v7 = vld [vmem:[#allocation8 + $0x104] sm:$0xf0]  ;;  %v1766_v12 = vld [vmem:[#allocation8 + $0x74] sm:$0xf]  ;;  %v1671_v14 = vor.u32 %v1847_v0, %v1670_v63  ;;  %v1599_v22 = vor.u32 %v1829_v5, %v1598_v4 }
  0x38   :  { %926 = vmatpush.bf16.msra.mxu1 %v1519_v28  ;;  %v1486_v8 = vld [vmem:[#allocation8 + $0x180] sm:$0xf]  ;;  %v1801_v11 = vld [vmem:[#allocation8 + $0x184] sm:$0xf0]  ;;  %v1352_v13 = vld [vmem:[#allocation8 + $0x78] sm:$0xf0]  ;;  %v1423_v19 = vor.u32 %v1785_v7, %v1422_v6 }
  0x39   :  { %886 = vmatpush.bf16.msrb.mxu2 %v1311_v39  ;;  %v1782_v15 = vld [vmem:[#allocation8 + $0xf4] sm:$0xf]  ;;  %v1416_v16 = vld [vmem:[#allocation8 + $0xf8] sm:$0xf0]  ;;  %v1662_v17 = vld [vmem:[#allocation8 + $0x2e0] sm:$0xf]  ;;  %v1487_v20 = vor.u32 %v1801_v11, %v1486_v8  ;;  %v1355_v21 = vor.u32 %v1766_v12, %v1352_v13 }
  0x3a   :  { %900 = vmatpush.bf16.msrb.mxu3 %v1375_v44  ;;  %v1845_v18 = vld [vmem:[#allocation8 + $0x2e4] sm:$0xf0]  ;;  %v1419_v23 = vor.u32 %v1782_v15, %v1416_v16  ;;  %v1590_v24 = vld [vmem:[#allocation8 + $0x250] sm:$0xf]  ;;  %v1764_v25 = vld [vmem:[#allocation8 + $0x64] sm:$0xf] }
  0x3b   :  { %913 = vmatpush.bf16.msra.mxu0 %v1447_v38  ;;  %v1344_v27 = vld [vmem:[#allocation8 + $0x68] sm:$0xf0]  ;;  %v1663_v28 = vor.u32 %v1845_v18, %v1662_v17  ;;  %v1827_v29 = vld [vmem:[#allocation8 + $0x254] sm:$0xf0]  ;;  %v1780_v30 = vld [vmem:[#allocation8 + $0xe4] sm:$0xf] }
  0x3c   :  { %927 = vmatpush.bf16.msra.mxu1 %v1511_v40  ;;  %v1408_v31 = vld [vmem:[#allocation8 + $0xe8] sm:$0xf0]  ;;  %v1654_v32 = vld [vmem:[#allocation8 + $0x2d0] sm:$0xf]  ;;  %v1843_v33 = vld [vmem:[#allocation8 + $0x2d4] sm:$0xf0]  ;;  %v1347_v34 = vor.u32 %v1764_v25, %v1344_v27  ;;  %v1591_v35 = vor.u32 %v1827_v29, %v1590_v24 }
  0x3d   :  { %887 = vmatpush.bf16.msrb.mxu2 %v1303_v26  ;;  %v1411_v36 = vor.u32 %v1780_v30, %v1408_v31  ;;  %v1655_v37 = vor.u32 %v1843_v33, %v1654_v32  ;;  %v1582_v38 = vld [vmem:[#allocation8 + $0x240] sm:$0xf]  ;;  %v1825_v39 = vld [vmem:[#allocation8 + $0x244] sm:$0xf0]  ;;  %v1762_v44 = vld [vmem:[#allocation8 + $0x54] sm:$0xf] }
  0x3e   :  { %901 = vmatpush.bf16.msrb.mxu3 %v1367_v56  ;;  %v1646_v40 = vld [vmem:[#allocation8 + $0x2c0] sm:$0xf]  ;;  %v1841_v41 = vld [vmem:[#allocation8 + $0x2c4] sm:$0xf0]  ;;  %v1583_v42 = vor.u32 %v1825_v39, %v1582_v38  ;;  %v1336_v45 = vld [vmem:[#allocation8 + $0x58] sm:$0xf0] }
  0x3f   :  { %914 = vmatpush.bf16.msra.mxu0 %v1439_v50  ;;  %v1647_v43 = vor.u32 %v1841_v41, %v1646_v40  ;;  %v1778_v46 = vld [vmem:[#allocation8 + $0xd4] sm:$0xf]  ;;  %v1339_v47 = vor.u32 %v1762_v44, %v1336_v45  ;;  %v1400_v48 = vld [vmem:[#allocation8 + $0xd8] sm:$0xf0]  ;;  %v1574_v50 = vld [vmem:[#allocation8 + $0x230] sm:$0xf] }
  0x40   :  { %928 = vmatpush.bf16.msra.mxu1 %v1503_v52  ;;  %v1403_v49 = vor.u32 %v1778_v46, %v1400_v48  ;;  %v1823_v51 = vld [vmem:[#allocation8 + $0x234] sm:$0xf0]  ;;  %v1638_v26 = vld [vmem:[#allocation8 + $0x2b0] sm:$0xf]  ;;  %v1760_v55 = vld [vmem:[#allocation8 + $0x44] sm:$0xf] }
  0x41   :  { %888 = vmatpush.bf16.msrb.mxu2 %v1295_v2  ;;  %v1575_v52 = vor.u32 %v1823_v51, %v1574_v50  ;;  %v1839_v53 = vld [vmem:[#allocation8 + $0x2b4] sm:$0xf0]  ;;  %v1328_v56 = vld [vmem:[#allocation8 + $0x48] sm:$0xf0]  ;;  %v1776_v57 = vld [vmem:[#allocation8 + $0xc4] sm:$0xf] }
  0x42   :  { %902 = vmatpush.bf16.msrb.mxu3 %v1359_v9  ;;  %v1639_v54 = vor.u32 %v1839_v53, %v1638_v26  ;;  %v1331_v58 = vor.u32 %v1760_v55, %v1328_v56  ;;  %v1392_v59 = vld [vmem:[#allocation8 + $0xc8] sm:$0xf0]  ;;  %v1566_v61 = vld [vmem:[#allocation8 + $0x220] sm:$0xf]  ;;  %v1821_v62 = vld [vmem:[#allocation8 + $0x224] sm:$0xf0] }
  0x43   :  { %915 = vmatpush.bf16.msra.mxu0 %v1431_v1  ;;  %v1395_v60 = vor.u32 %v1776_v57, %v1392_v59  ;;  %v1630_v63 = vld [vmem:[#allocation8 + $0x2a0] sm:$0xf]  ;;  %v1567_v0 = vor.u32 %v1821_v62, %v1566_v61  ;;  %v1837_v1 = vld [vmem:[#allocation8 + $0x2a4] sm:$0xf0]  ;;  %v1320_v4 = vld [vmem:[#allocation8 + $0x38] sm:$0xf0] }
  0x44   :  { %929 = vmatpush.bf16.msra.mxu1 %v1495_v3  ;;  %v1631_v2 = vor.u32 %v1837_v1, %v1630_v63  ;;  %v1758_v3 = vld [vmem:[#allocation8 + $0x34] sm:$0xf]  ;;  %v1384_v7 = vld [vmem:[#allocation8 + $0xb8] sm:$0xf0]  ;;  %v1558_v9 = vld [vmem:[#allocation8 + $0x210] sm:$0xf] }
  0x45   :  { %937 = vmatpush.bf16.msra.mxu2 %v1607_v10  ;;  %v1774_v5 = vld [vmem:[#allocation8 + $0xb4] sm:$0xf]  ;;  %v1323_v6 = vor.u32 %v1758_v3, %v1320_v4  ;;  %v1819_v10 = vld [vmem:[#allocation8 + $0x214] sm:$0xf0]  ;;  %v1622_v12 = vld [vmem:[#allocation8 + $0x290] sm:$0xf] }
  0x46   :  { %951 = vmatpush.bf16.msra.mxu3 %v1671_v14  ;;  %v1387_v8 = vor.u32 %v1774_v5, %v1384_v7  ;;  %v1559_v11 = vor.u32 %v1819_v10, %v1558_v9  ;;  %v1835_v13 = vld [vmem:[#allocation8 + $0x294] sm:$0xf0]  ;;  %v1756_v15 = vld [vmem:[#allocation8 + $0x24] sm:$0xf]  ;;  %v1312_v16 = vld [vmem:[#allocation8 + $0x28] sm:$0xf0] }
  0x47   :  { %916 = vmatpush.bf16.msra.mxu0 %v1423_v19  ;;  %v1623_v14 = vor.u32 %v1835_v13, %v1622_v12  ;;  %v1772_v17 = vld [vmem:[#allocation8 + $0xa4] sm:$0xf]  ;;  %v1315_v18 = vor.u32 %v1756_v15, %v1312_v16  ;;  %v1376_v19 = vld [vmem:[#allocation8 + $0xa8] sm:$0xf0]  ;;  %v1833_v25 = vld [vmem:[#allocation8 + $0x284] sm:$0xf0] }
  0x48   :  { %930 = vmatpush.bf16.msra.mxu1 %v1487_v20  ;;  %v1379_v20 = vor.u32 %v1772_v17, %v1376_v19  ;;  %v1304_v29 = vld [vmem:[#allocation8 + $0x18] sm:$0xf0]  ;;  %v1770_v30 = vld [vmem:[#allocation8 + $0x94] sm:$0xf]  ;;  %v1796_v1 = vld [vmem:[#allocation8 + $0x164] sm:$0xf] }
  0x49   :  { %938 = vmatpush.bf16.msra.mxu2 %v1599_v22  ;;  %v1817_v22 = vld [vmem:[#allocation8 + $0x204] sm:$0xf0]  ;;  %v1368_v32 = vld [vmem:[#allocation8 + $0x98] sm:$0xf0]  ;;  %v1798_v26 = vld [vmem:[#allocation8 + $0x174] sm:$0xf] }
  0x4a   :  { %952 = vmatpush.bf16.msra.mxu3 %v1663_v28  ;;  %v1754_v28 = vld [vmem:[#allocation8 + $0x14] sm:$0xf]  ;;  %v1371_v33 = vor.u32 %v1770_v30, %v1368_v32  ;;  %v2116_v40 = vld [vmem:[#allocation7] sm:$0x3f]  ;;  %v1812_v5 = vld [vmem:[#allocation8 + $0x1e4] sm:$0xf] }
  0x4b   :  { %965 = vmatpush.bf16.msrb.mxu0 %v1355_v21  ;;  %v1550_v21 = vld [vmem:[#allocation8 + $0x200] sm:$0xf]  ;;  %v1307_v31 = vor.u32 %v1754_v28, %v1304_v29  ;;  %v122_v44 = vperm.slane %v2116_v40, 1  ;;  %v123_v53 = vperm.slane %v2116_v40, 2  ;;  %v1814_v55 = vld [vmem:[#allocation8 + $0x1f4] sm:$0xf] }
  0x4c   :  { %979 = vmatpush.bf16.msrb.mxu1 %v1419_v23  ;;  %v1614_v23 = vld [vmem:[#allocation8 + $0x280] sm:$0xf]  ;;  %v1551_v24 = vor.u32 %v1817_v22, %v1550_v21  ;;  %v1544_v56 = vld [vmem:[#allocation8 + $0x1f8] sm:$0xf0]  ;;  %v125_v9 = vperm.slane %v2116_v40, 4  ;;  %v126_v30 = vperm.slane %v2116_v40, 5 }
  0x4d   :  { %939 = vmatpush.bf16.msra.mxu2 %v1591_v35  ;;  %v1615_v27 = vor.u32 %v1833_v25, %v1614_v23  ;;  %v1296_v35 = vld [vmem:[#allocation8 + $0x8] sm:$0xf0]  ;;  %v1608_v15 = vld [vmem:[#allocation8 + $0x278] sm:$0xf0]  ;;  %v1846_v16 = vld [vmem:[#allocation8 + $0x2f4] sm:$0xf] }
  0x4e   :  { %953 = vmatpush.bf16.msra.mxu3 %v1655_v37  ;;  %v1360_v37 = vld [vmem:[#allocation8 + $0x88] sm:$0xf0]  ;;  %v1794_v21 = vld [vmem:[#allocation8 + $0x154] sm:$0xf]  ;;  %v1464_v22 = vld [vmem:[#allocation8 + $0x158] sm:$0xf0] }
  0x4f   :  { %966 = vmatpush.bf16.msrb.mxu0 %v1347_v34  ;;  %v1752_v34 = vld [vmem:[#allocation8 + $0x4] sm:$0xf]  ;;  %v1810_v25 = vld [vmem:[#allocation8 + $0x1d4] sm:$0xf] }
  0x50   :  { %980 = vmatpush.bf16.msrb.mxu1 %v1411_v36  ;;  %v1768_v36 = vld [vmem:[#allocation8 + $0x84] sm:$0xf]  ;;  %v1299_v38 = vor.u32 %v1752_v34, %v1296_v35  ;;  %v1467_v34 = vor.u32 %v1794_v21, %v1464_v22  ;;  %v1576_v21 = vld [vmem:[#allocation8 + $0x238] sm:$0xf0] }
  0x51   :  { %940 = vmatpush.bf16.msra.mxu2 %v1583_v42  ;;  %v1363_v39 = vor.u32 %v1768_v36, %v1360_v37  ;;  %v1828_v35 = vld [vmem:[#allocation8 + $0x264] sm:$0xf]  ;;  %v1600_v36 = vld [vmem:[#allocation8 + $0x268] sm:$0xf0] }
  0x52   :  { %954 = vmatpush.bf16.msra.mxu3 %v1647_v43  ;;  %v121_v43 = vperm.slane %v2116_v40, 0  ;;  %v1844_v37 = vld [vmem:[#allocation8 + $0x2e4] sm:$0xf] }
  0x53   :  { %967 = vmatpush.bf16.msrb.mxu0 %v1339_v47 }
  0x54   :  { %981 = vmatpush.bf16.msrb.mxu1 %v1403_v49 }
  0x55   :  { %941 = vmatpush.bf16.msra.mxu2 %v1575_v52  ;;  %v1480_v52 = vld [vmem:[#allocation8 + $0x178] sm:$0xf0] }
  0x56   :  { %955 = vmatpush.bf16.msra.mxu3 %v1639_v54  ;;  %v1483_v62 = vor.u32 %v1798_v26, %v1480_v52  ;;  %v1592_v26 = vld [vmem:[#allocation8 + $0x258] sm:$0xf0] }
  0x57   :  { %968 = vmatpush.bf16.msrb.mxu0 %v1331_v58  ;;  %v124_v58 = vperm.slane %v2116_v40, 3  ;;  %v1520_v40 = vld [vmem:[#allocation8 + $0x1c8] sm:$0xf0] }
  0x58   :  { %982 = vmatpush.bf16.msrb.mxu1 %v1395_v60 }
  0x59   :  { %942 = vmatpush.bf16.msra.mxu2 %v1567_v0  ;;  %v1547_v0 = vor.u32 %v1814_v55, %v1544_v56  ;;  %v1842_v55 = vld [vmem:[#allocation8 + $0x2d4] sm:$0xf]  ;;  %v1656_v56 = vld [vmem:[#allocation8 + $0x2d8] sm:$0xf0] }
  0x5a   :  { %956 = vmatpush.bf16.msra.mxu3 %v1631_v2  ;;  %v1472_v2 = vld [vmem:[#allocation8 + $0x168] sm:$0xf0] }
  0x5b   :  { %969 = vmatpush.bf16.msrb.mxu0 %v1323_v6  ;;  %v1536_v6 = vld [vmem:[#allocation8 + $0x1e8] sm:$0xf0]  ;;  %v1475_v13 = vor.u32 %v1796_v1, %v1472_v2 }
  0x5c   :  { %983 = vmatpush.bf16.msrb.mxu1 %v1387_v8  ;;  %v1539_v19 = vor.u32 %v1812_v5, %v1536_v6  ;;  %v1659_v5 = vor.u32 %v1842_v55, %v1656_v56  ;;  %v1824_v6 = vld [vmem:[#allocation8 + $0x244] sm:$0xf]  ;;  %v1616_v55 = vld [vmem:[#allocation8 + $0x288] sm:$0xf0] }
  0x5d   :  { %943 = vmatpush.bf16.msra.mxu2 %v1559_v11 }
  0x5e   :  { %957 = vmatpush.bf16.msra.mxu3 %v1623_v14  ;;  %v1830_v14 = vld [vmem:[#allocation8 + $0x274] sm:$0xf] }
  0x5f   :  { %970 = vmatpush.bf16.msrb.mxu0 %v1315_v18 }
  0x60   :  { %984 = vmatpush.bf16.msrb.mxu1 %v1379_v20  ;;  %v1672_v20 = vld [vmem:[#allocation8 + $0x2f8] sm:$0xf0] }
  0x61   :  { %944 = vmatpush.bf16.msra.mxu2 %v1551_v24 }
  0x62   :  { %958 = vmatpush.bf16.msra.mxu3 %v1615_v27  ;;  %v1528_v27 = vld [vmem:[#allocation8 + $0x1d8] sm:$0xf0] }
  0x63   :  { %971 = vmatpush.bf16.msrb.mxu0 %v1307_v31  ;;  %v1611_v31 = vor.u32 %v1830_v14, %v1608_v15  ;;  %v1440_v15 = vld [vmem:[#allocation8 + $0x128] sm:$0xf0] }
  0x64   :  { %985 = vmatpush.bf16.msrb.mxu1 %v1371_v33  ;;  %v1675_v33 = vor.u32 %v1846_v16, %v1672_v20  ;;  %v1804_v16 = vld [vmem:[#allocation8 + $0x1a4] sm:$0xf]  ;;  %v1822_v20 = vld [vmem:[#allocation8 + $0x234] sm:$0xf] }
  0x67   :  { %972 = vmatpush.bf16.msrb.mxu0 %v1299_v38 }
  0x68   :  { %986 = vmatpush.bf16.msrb.mxu1 %v1363_v39  ;;  %v1531_v39 = vor.u32 %v1810_v25, %v1528_v27  ;;  %v1640_v25 = vld [vmem:[#allocation8 + $0x2b8] sm:$0xf0]  ;;  %v1786_v27 = vld [vmem:[#allocation8 + $0x114] sm:$0xf] }
  0x9f   :  { %v206_v41 = vpop.f32.mrf.mxu0 }
  0xa0   :  { %v220_v42 = vpop.f32.mrf.mxu1  ;;  %v207_v45 = vadd.f32 %v206_v41, %v121_v43  ;;  %v1664_v41 = vld [vmem:[#allocation8 + $0x2e8] sm:$0xf0] }
  0xa1   :  { %v221_v47 = vadd.f32 %v220_v42, %v122_v44  ;;  %v1792_v42 = vld [vmem:[#allocation8 + $0x144] sm:$0xf] }
  0xa2   :  { %v281_v57 = vmax.f32 %v207_v45, 0.0 }
  0xa3   :  { %v282_v60 = vmax.f32 %v221_v47, 0.0 }
  0xa7   :  { %v234_v46 = vpop.f32.mrf.mxu2  ;;  %v208_v49 = vpop.f32.mrf.mxu0 }
  0xa8   :  { %v248_v48 = vpop.f32.mrf.mxu3  ;;  %v209_v50 = vadd.f32 %v208_v49, %v121_v43  ;;  %v222_v51 = vpop.f32.mrf.mxu1  ;;  %v235_v3 = vadd.f32 %v234_v46, %v123_v53  ;;  %v1456_v43 = vld [vmem:[#allocation8 + $0x148] sm:$0xf0]  ;;  %v1603_v46 = vor.u32 %v1828_v35, %v1600_v36  ;;  %v1667_v49 = vor.u32 %v1844_v37, %v1664_v41 }
  0xa9   :  { %v223_v54 = vadd.f32 %v222_v51, %v122_v44  ;;  %v249_v7 = vadd.f32 %v248_v48, %v124_v58  ;;  %v1808_v44 = vld [vmem:[#allocation8 + $0x1c4] sm:$0xf]  ;;  %v1826_v51 = vld [vmem:[#allocation8 + $0x254] sm:$0xf]  ;;  %v1568_v35 = vld [vmem:[#allocation8 + $0x228] sm:$0xf0] }
  0xaa   :  { %v287_v59 = vmax.f32 %v209_v50, 0.0  ;;  %v283_v23 = vmax.f32 %v235_v3, 0.0  ;;  %v1459_v50 = vor.u32 %v1792_v42, %v1456_v43  ;;  %v1595_v1 = vor.u32 %v1826_v51, %v1592_v26  ;;  %v1632_v41 = vld [vmem:[#allocation8 + $0x2a8] sm:$0xf0]  ;;  %v1784_v42 = vld [vmem:[#allocation8 + $0x104] sm:$0xf] }
  0xab   :  { %v288_v61 = vmax.f32 %v223_v54, 0.0  ;;  %v284_v28 = vmax.f32 %v249_v7, 0.0  ;;  %v1523_v54 = vor.u32 %v1808_v44, %v1520_v40  ;;  %v1584_v7 = vld [vmem:[#allocation8 + $0x248] sm:$0xf0]  ;;  %v1800_v44 = vld [vmem:[#allocation8 + $0x184] sm:$0xf] }
  0xac   :  { %v2122_v63 = vpack.c.bf16 %v287_v59, %v281_v57  ;;  %v1790_v57 = vld [vmem:[#allocation8 + $0x134] sm:$0xf]  ;;  %v1448_v59 = vld [vmem:[#allocation8 + $0x138] sm:$0xf0]  ;;  %v1424_v43 = vld [vmem:[#allocation8 + $0x108] sm:$0xf0] }
  0xad   :  { %v2124_v4 = vpack.c.bf16 %v288_v61, %v282_v60  ;;  %v1806_v60 = vld [vmem:[#allocation8 + $0x1b4] sm:$0xf]  ;;  %v1512_v61 = vld [vmem:[#allocation8 + $0x1b8] sm:$0xf0]  ;;  %v1488_v40 = vld [vmem:[#allocation8 + $0x188] sm:$0xf0] }
  0xae   :  { %889 = vmatmul.bf16.vlgmr.msrb.gmra.mxu2 %v2122_v63  ;;  %v1834_v51 = vld [vmem:[#allocation8 + $0x294] sm:$0xf]  ;;  %v1624_v26 = vld [vmem:[#allocation8 + $0x298] sm:$0xf0] }
  0xaf   :  { %v236_v8 = vpop.f32.mrf.mxu2  ;;  %903 = vmatmul.bf16.vlgmr.msrb.gmra.mxu3 %v2124_v4  ;;  %v262_v12 = vpop.f32.mrf.mxu0  ;;  %993 = vmatpush.bf16.msrb.mxu2 %v1483_v62 }
  0xb0   :  { %v237_v10 = vadd.f32 %v236_v8, %v123_v53  ;;  %v250_v11 = vpop.f32.mrf.mxu3  ;;  %v276_v18 = vpop.f32.mrf.mxu1  ;;  %1007 = vmatpush.bf16.msrb.mxu3 %v1547_v0  ;;  %v263_v45 = vadd.f32 %v262_v12, %v125_v9  ;;  %v1648_v12 = vld [vmem:[#allocation8 + $0x2c8] sm:$0xf0] }
  0xb1   :  { %v251_v17 = vadd.f32 %v250_v11, %v124_v58  ;;  %v277_v47 = vadd.f32 %v276_v18, %v126_v30  ;;  %v1840_v11 = vld [vmem:[#allocation8 + $0x2c4] sm:$0xf]  ;;  %v1587_v18 = vor.u32 %v1824_v6, %v1584_v7 }
  0xb2   :  { %v289_v24 = vmax.f32 %v237_v10, 0.0  ;;  %v285_v62 = vmax.f32 %v263_v45, 0.0  ;;  %v1515_v10 = vor.u32 %v1806_v60, %v1512_v61  ;;  %v1853_v60 = vld [vmem:[#allocation10 + $0x28] sm:$0xff]  ;;  %v1852_v61 = vld [vmem:[#allocation10 + $0x20] sm:$0xff] }
  0xb3   :  { %v290_v29 = vmax.f32 %v251_v17, 0.0  ;;  %994 = vmatpush.bf16.msrb.mxu2 %v1475_v13  ;;  %v286_v2 = vmax.f32 %v277_v47, 0.0  ;;  %v1788_v13 = vld [vmem:[#allocation8 + $0x124] sm:$0xf]  ;;  %v1504_v17 = vld [vmem:[#allocation8 + $0x1a8] sm:$0xf0] }
  0xb4   :  { %v2130_v32 = vpack.c.bf16 %v289_v24, %v283_v23  ;;  %1008 = vmatpush.bf16.msrb.mxu3 %v1539_v19  ;;  %v1651_v19 = vor.u32 %v1840_v11, %v1648_v12  ;;  %v1443_v22 = vor.u32 %v1788_v13, %v1440_v15  ;;  %v1507_v23 = vor.u32 %v1804_v16, %v1504_v17  ;;  %v1838_v24 = vld [vmem:[#allocation8 + $0x2b4] sm:$0xf]  ;;  %v1859_v12 = vld [vmem:[#allocation10 + $0x58] sm:$0xff] }
  0xb5   :  { %v2132_v38 = vpack.c.bf16 %v290_v29, %v284_v28  ;;  %v1432_v28 = vld [vmem:[#allocation8 + $0x118] sm:$0xf0]  ;;  %v1802_v29 = vld [vmem:[#allocation8 + $0x194] sm:$0xf] }
  0xb6   :  { %917 = vmatmul.bf16.vlgmr.msra.gmra.mxu0 %v2130_v32  ;;  %v1435_v36 = vor.u32 %v1786_v27, %v1432_v28  ;;  %v1818_v47 = vld [vmem:[#allocation8 + $0x214] sm:$0xf] }
  0xb7   :  { %931 = vmatmul.bf16.vlgmr.msra.gmra.mxu1 %v2132_v38  ;;  %1021 = vmatpush.bf16.msra.mxu0 %v1611_v31  ;;  %v264_v48 = vpop.f32.mrf.mxu0  ;;  %v1579_v31 = vor.u32 %v1822_v20, %v1576_v21  ;;  %v1857_v21 = vld [vmem:[#allocation10 + $0x48] sm:$0xff] }
  0xb8   :  { %1035 = vmatpush.bf16.msra.mxu1 %v1675_v33  ;;  %995 = vmatpush.bf16.msrb.mxu2 %v1467_v34  ;;  %v265_v52 = vadd.f32 %v264_v48, %v125_v9  ;;  %v278_v53 = vpop.f32.mrf.mxu1  ;;  %v1451_v9 = vor.u32 %v1790_v57, %v1448_v59  ;;  %v1643_v33 = vor.u32 %v1838_v24, %v1640_v25  ;;  %v1820_v34 = vld [vmem:[#allocation8 + $0x224] sm:$0xf]  ;;  %v1560_v48 = vld [vmem:[#allocation8 + $0x218] sm:$0xf0]  ;;  %v1854_v59 = vld [vmem:[#allocation10 + $0x30] sm:$0xff] }
  0xb9   :  { %1009 = vmatpush.bf16.msrb.mxu3 %v1531_v39  ;;  %v279_v58 = vadd.f32 %v278_v53, %v126_v30  ;;  %v1496_v30 = vld [vmem:[#allocation8 + $0x198] sm:$0xf0]  ;;  %v1836_v39 = vld [vmem:[#allocation8 + $0x2a4] sm:$0xf]  ;;  %v1571_v45 = vor.u32 %v1820_v34, %v1568_v35 }
  0xba   :  { %v291_v0 = vmax.f32 %v265_v52, 0.0  ;;  %v1499_v37 = vor.u32 %v1802_v29, %v1496_v30  ;;  %v1563_v52 = vor.u32 %v1818_v47, %v1560_v48  ;;  %v1816_v53 = vld [vmem:[#allocation8 + $0x204] sm:$0xf] }
  0xbb   :  { %1022 = vmatpush.bf16.msra.mxu0 %v1603_v46  ;;  %v292_v3 = vmax.f32 %v279_v58, 0.0  ;;  %v1635_v46 = vor.u32 %v1836_v39, %v1632_v41  ;;  %v1855_v58 = vld [vmem:[#allocation10 + $0x38] sm:$0xff]  ;;  %v1856_v29 = vld [vmem:[#allocation10 + $0x40] sm:$0xff] }
  0xbc   :  { %1036 = vmatpush.bf16.msra.mxu1 %v1667_v49  ;;  %996 = vmatpush.bf16.msrb.mxu2 %v1459_v50  ;;  %v2136_v8 = vpack.c.bf16 %v291_v0, %v285_v62  ;;  %v1427_v49 = vor.u32 %v1784_v42, %v1424_v43  ;;  %v1491_v50 = vor.u32 %v1800_v44, %v1488_v40  ;;  %v1851_v62 = vld [vmem:[#allocation10 + $0x18] sm:$0xff] }
  0xbd   :  { %1010 = vmatpush.bf16.msrb.mxu3 %v1523_v54  ;;  %v2138_v14 = vpack.c.bf16 %v292_v3, %v286_v2  ;;  %v1552_v54 = vld [vmem:[#allocation8 + $0x208] sm:$0xf0]  ;;  %v1863_v0 = vld [vmem:[#allocation10 + $0x78] sm:$0xff]  ;;  %v1848_v2 = vld [vmem:[#allocation10] sm:$0xff] }
  0xbe   :  { %945 = vmatmul.bf16.vlgmr.msra.gmra.mxu2 %v2136_v8  ;;  %v1555_v56 = vor.u32 %v1816_v53, %v1552_v54  ;;  %v1861_v3 = vld [vmem:[#allocation10 + $0x68] sm:$0xff] }
  0xbf   :  { %1023 = vmatpush.bf16.msra.mxu0 %v1595_v1  ;;  %959 = vmatmul.bf16.vlgmr.msra.gmra.mxu3 %v2138_v14  ;;  %v1862_v1 = vld [vmem:[#allocation10 + $0x70] sm:$0xff] }
  0xc0   :  { %1037 = vmatpush.bf16.msra.mxu1 %v1659_v5  ;;  %997 = vmatpush.bf16.msrb.mxu2 %v1451_v9  ;;  %v395_v5 = vld [vmem:[%s2164_s4] sm:$0x3] }
  0xc1   :  { %1011 = vmatpush.bf16.msrb.mxu3 %v1515_v10  ;;  %v1860_v10 = vld [vmem:[#allocation10 + $0x60] sm:$0xff]  ;;  %v397_v11 = vperm.slane %v395_v5, 0  ;;  %v398_v35 = vperm.slane %v395_v5, 1 }
  0xc3   :  { %1024 = vmatpush.bf16.msra.mxu0 %v1587_v18  ;;  %v1858_v18 = vld [vmem:[#allocation10 + $0x50] sm:$0xff] }
  0xc4   :  { %1038 = vmatpush.bf16.msra.mxu1 %v1651_v19  ;;  %998 = vmatpush.bf16.msrb.mxu2 %v1443_v22 }
  0xc5   :  { %1012 = vmatpush.bf16.msrb.mxu3 %v1507_v23 }
  0xc6   :  { %973 = vmatmul.bf16.vlgmr.msrb.gmra.mxu0 %v2122_v63  ;;  %v1627_v63 = vor.u32 %v1834_v51, %v1624_v26 }
  0xc7   :  { %987 = vmatmul.bf16.vlgmr.msrb.gmra.mxu1 %v2124_v4  ;;  %1025 = vmatpush.bf16.msra.mxu0 %v1579_v31  ;;  %v1832_v4 = vld [vmem:[#allocation8 + $0x284] sm:$0xf] }
  0xc8   :  { %1039 = vmatpush.bf16.msra.mxu1 %v1643_v33  ;;  %999 = vmatpush.bf16.msrb.mxu2 %v1435_v36  ;;  %v1619_v57 = vor.u32 %v1832_v4, %v1616_v55 }
  0xc9   :  { %1013 = vmatpush.bf16.msrb.mxu3 %v1499_v37 }
  0xcb   :  { %1026 = vmatpush.bf16.msra.mxu0 %v1571_v45 }
  0xcc   :  { %1040 = vmatpush.bf16.msra.mxu1 %v1635_v46  ;;  %1000 = vmatpush.bf16.msrb.mxu2 %v1427_v49 }
  0xcd   :  { %1014 = vmatpush.bf16.msrb.mxu3 %v1491_v50 }
  0xcf   :  { %1027 = vmatpush.bf16.msra.mxu0 %v1563_v52  ;;  %1001 = vmatmul.bf16.vlgmr.msrb.gmra.mxu2 %v2130_v32  ;;  %v1850_v32 = vld [vmem:[#allocation10 + $0x10] sm:$0xff] }
  0xd0   :  { %1041 = vmatpush.bf16.msra.mxu1 %v1627_v63  ;;  %1015 = vmatmul.bf16.vlgmr.msrb.gmra.mxu3 %v2132_v38  ;;  %v1849_v38 = vld [vmem:[#allocation10 + $0x8] sm:$0xff] }
  0xd1   :  { %1187 = vmatpush.bf16.msra.mxu2 %v1855_v58  ;;  %1201 = vmatpush.bf16.msra.mxu3 %v1863_v0 }
  0xd3   :  { %1028 = vmatpush.bf16.msra.mxu0 %v1555_v56 }
  0xd4   :  { %1042 = vmatpush.bf16.msra.mxu1 %v1619_v57 }
  0xd5   :  { %1188 = vmatpush.bf16.msra.mxu2 %v1854_v59  ;;  %1202 = vmatpush.bf16.msra.mxu3 %v1862_v1 }
  0xd6   :  { %1029 = vmatmul.bf16.vlgmr.msra.gmra.mxu0 %v2136_v8 }
  0xd7   :  { %1043 = vmatmul.bf16.vlgmr.msra.gmra.mxu1 %v2138_v14 }
  0xd9   :  { %1189 = vmatpush.bf16.msra.mxu2 %v1853_v60  ;;  %1203 = vmatpush.bf16.msra.mxu3 %v1861_v3  ;;  %v1876_v3 = vld [vmem:[%s2166_s6] ss:$0 sm:$0xff] }
  0xdd   :  { %1190 = vmatpush.bf16.msra.mxu2 %v1852_v61  ;;  %1204 = vmatpush.bf16.msra.mxu3 %v1860_v10 }
  0xe1   :  { %1191 = vmatpush.bf16.msra.mxu2 %v1851_v62  ;;  %1205 = vmatpush.bf16.msra.mxu3 %v1859_v12 }
  0xe5   :  { %1192 = vmatpush.bf16.msra.mxu2 %v1850_v32  ;;  %1206 = vmatpush.bf16.msra.mxu3 %v1858_v18 }
  0xe9   :  { %1193 = vmatpush.bf16.msra.mxu2 %v1849_v38  ;;  %1207 = vmatpush.bf16.msra.mxu3 %v1857_v21 }
  0xed   :  { %1194 = vmatpush.bf16.msra.mxu2 %v1848_v2  ;;  %1208 = vmatpush.bf16.msra.mxu3 %v1856_v29 }
 0x131   :  { %v890_v6 = vpop.f32.mrf.mxu2 }
 0x132   :  { %v904_v7 = vpop.f32.mrf.mxu3  ;;  %v891_v13 = vadd.f32 %v890_v6, %v397_v11 }
 0x133   :  { %v918_v8 = vpop.f32.mrf.mxu0 }
 0x134   :  { %v932_v9 = vpop.f32.mrf.mxu1  ;;  %v905_v19 = vadd.f32 %v904_v7, %v891_v13 }
 0x136   :  { %v919_v22 = vadd.f32 %v918_v8, %v905_v19 }
 0x138   :  { %v933_v30 = vadd.f32 %v932_v9, %v919_v22 }
 0x139   :  { %v892_v14 = vpop.f32.mrf.mxu2 }
 0x13a   :  { %v906_v15 = vpop.f32.mrf.mxu3  ;;  %v893_v20 = vadd.f32 %v892_v14, %v397_v11 }
 0x13b   :  { %v920_v16 = vpop.f32.mrf.mxu0 }
 0x13c   :  { %v934_v17 = vpop.f32.mrf.mxu1  ;;  %v907_v23 = vadd.f32 %v906_v15, %v893_v20 }
 0x13e   :  { %v921_v31 = vadd.f32 %v920_v16, %v907_v23 }
 0x140   :  { %v935_v34 = vadd.f32 %v934_v17, %v921_v31 }
 0x141   :  { %v946_v24 = vpop.f32.mrf.mxu2 }
 0x142   :  { %v960_v25 = vpop.f32.mrf.mxu3  ;;  %v947_v33 = vadd.f32 %v946_v24, %v933_v30 }
 0x143   :  { %v974_v27 = vpop.f32.mrf.mxu0 }
 0x144   :  { %v988_v28 = vpop.f32.mrf.mxu1  ;;  %v961_v37 = vadd.f32 %v960_v25, %v947_v33  ;;  %v975_v40 = vadd.f32 %v974_v27, %v398_v35 }
 0x146   :  { %v1049_v45 = vmax.f32 %v961_v37, 0.0  ;;  %v989_v48 = vadd.f32 %v988_v28, %v975_v40 }
 0x149   :  { %v948_v36 = vpop.f32.mrf.mxu2 }
 0x14a   :  { %v949_v39 = vadd.f32 %v948_v36, %v935_v34  ;;  %v962_v41 = vpop.f32.mrf.mxu3 }
 0x14b   :  { %v976_v42 = vpop.f32.mrf.mxu0 }
 0x14c   :  { %v963_v43 = vadd.f32 %v962_v41, %v949_v39  ;;  %v990_v44 = vpop.f32.mrf.mxu1  ;;  %v977_v52 = vadd.f32 %v976_v42, %v398_v35 }
 0x14e   :  { %v1051_v46 = vmax.f32 %v963_v43, 0.0  ;;  %v991_v54 = vadd.f32 %v990_v44, %v977_v52 }
 0x150   :  { %v1053_v47 = vpack.c.bf16 %v1051_v46, %v1049_v45 }
 0x152   :  { %v1002_v49 = vpop.f32.mrf.mxu2  ;;  %1195 = vmatmul.bf16.vlgmr.msra.gmra.mxu2 %v1053_v47 }
 0x153   :  { %v1003_v50 = vadd.f32 %v1002_v49, %v989_v48  ;;  %v1016_v51 = vpop.f32.mrf.mxu3  ;;  %v1030_v26 = vpop.f32.mrf.mxu0 }
 0x154   :  { %v1044_v63 = vpop.f32.mrf.mxu1 }
 0x155   :  { %v1017_v53 = vadd.f32 %v1016_v51, %v1003_v50 }
 0x157   :  { %v1031_v55 = vadd.f32 %v1030_v26, %v1017_v53 }
 0x159   :  { %v1045_v60 = vadd.f32 %v1044_v63, %v1031_v55 }
 0x15a   :  { %v1004_v4 = vpop.f32.mrf.mxu2 }
 0x15b   :  { %v1005_v56 = vadd.f32 %v1004_v4, %v991_v54  ;;  %v1018_v57 = vpop.f32.mrf.mxu3  ;;  %v1032_v59 = vpop.f32.mrf.mxu0  ;;  %v1050_v0 = vmax.f32 %v1045_v60, 0.0 }
 0x15c   :  { %v1046_v62 = vpop.f32.mrf.mxu1 }
 0x15d   :  { %v1019_v58 = vadd.f32 %v1018_v57, %v1005_v56 }
 0x15f   :  { %v1033_v61 = vadd.f32 %v1032_v59, %v1019_v58 }
 0x161   :  { %v1047_v32 = vadd.f32 %v1046_v62, %v1033_v61 }
 0x163   :  { %v1052_v38 = vmax.f32 %v1047_v32, 0.0 }
 0x165   :  { %v1054_v1 = vpack.c.bf16 %v1052_v38, %v1050_v0 }
 0x167   :  { %1209 = vmatmul.bf16.vlgmr.msra.gmra.mxu3 %v1054_v1 }
 0x1d5   :  { %v1196_v2 = vpop.f32.mrf.mxu2 }
 0x1d6   :  { %v1197_v5 = vadd.f32 %v1876_v3, %v1196_v2 }
 0x1dd   :  { %v1198_v8 = vpop.f32.mrf.mxu2 }
 0x1de   :  { %v1199_v9 = vadd.f32 %v1876_v3, %v1198_v8 }
 0x1ea   :  { %v1210_v6 = vpop.f32.mrf.mxu3 }
 0x1eb   :  { %v1211_v7 = vadd.f32 %v1210_v6, %v1197_v5 }
 0x1ed   :  { %1215 = vst [vmem:[#allocation11] sm:$0xff] %v1211_v7 }
 0x1f2   :  { %v1212_v10 = vpop.f32.mrf.mxu3 }
 0x1f3   :  { %v1213_v11 = vadd.f32 %v1212_v10, %v1199_v9 }
 0x1f5   :  { %1216 = vst [vmem:[#allocation11 + $0x8] sm:$0xff] %v1213_v11 }
 0x1f6   :  { %1220 = vsyncadd [#allocation4], 128  ;;  %s1223_s9 = sshll.u32 %s2167_s7, 4  ;;  %s2040_s10 = smov [#allocation11]   ;;  %s1224_s9 = int_to_ptr.hbm [resolvable:$true] %s1223_s9 }
 0x1f7   :  { %s1221_s11 = sshll.u32 %s2040_s10, 4  ;;  %s1222_s11 = int_to_ptr.vmem [resolvable:$true] %s1221_s11 }
 0x1f8   :  { %1229 = dma.vmem_to_hbm [thread:$0]  %s1222_s11, 128, %s1224_s9, [#allocation4], %s2033_s1, %s2033_s1, %s2034_s16  }
 0x1f9   :  { %2027 = dma.done.wait [#allocation4], 256  }
 0x1fa   :  { %2028 = vsyncadd [#allocation4], 4294967040 }
 0x1fb   :  { %1234 = vsyncpa [#allocation3], 1 }
 0x1fc   :  { %1235 = vsyncpa [#allocation6], 1 }
 0x1fd   :  { %1236 = vsyncpa [#allocation9], 1 }
 0x1fe   :  { %1237 = vsyncpa [#allocation4], 1 }

</bundles_post_ra>
